<compile_context>
chip_gen: v6e
topology: v6e:2x2x1
jax: 0.10.0
libtpu: 0.0.40
codegen_flags: <defaults>
</compile_context>

<pallas_src>
import math
import numpy as np
import jax
import jax.numpy as jnp
from jax.experimental import pallas as pl
from jax.experimental.pallas import tpu as pltpu

_SQRT_HALF = 0.7071067811865476      # 1/sqrt(2)
_SQRT_2_OVER_PI = 0.7978845608028654  # sqrt(2/pi), for tanh-approx GELU


def _round_up(x, m):
    return (x + m - 1) // m * m


# ----------------------------------------------------------------------------
# Fused classification-head kernel: [LayerNorm -> GELU -> Linear] x n_layers
# Everything runs at the TRUE feature widths (32 -> 21 -> 11 -> 1); Mosaic
# handles the sub-128 lane widths with masked vregs, no explicit padding.
# ----------------------------------------------------------------------------
def _make_fused_cls_head_kernel(dims, use_tanh_gelu=False):
    n_layers = len(dims) - 1

    def kernel(*refs):
        # refs = (x_ref, g0, b0, w0, bias0, g1, b1, w1, bias1, ..., o_ref)
        x_ref = refs[0]
        o_ref = refs[1 + 4 * n_layers]

        h = x_ref[...].astype(jnp.float32)            # (tile_rows, d0)

        for j in range(n_layers):
            gamma = refs[1 + 4 * j][...]              # (1, din)
            beta = refs[2 + 4 * j][...]               # (1, din)
            w = refs[3 + 4 * j][...]                  # (din, dout)
            bias = refs[4 + 4 * j][...]               # (1, dout)

            inv_d = 1.0 / float(dims[j])

            # LayerNorm over the true feature width (no masks / iota needed).
            mean = jnp.sum(h, axis=-1, keepdims=True) * inv_d
            xc = h - mean
            var = jnp.sum(xc * xc, axis=-1, keepdims=True) * inv_d
            y = xc * jax.lax.rsqrt(var + 1e-5) * gamma + beta  # eps = nn.LayerNorm default

            # GELU: exact erf (nn.GELU default) or tanh approximation (EUP slot).
            if use_tanh_gelu:
                g = 0.5 * y * (1.0 + jnp.tanh(
                    _SQRT_2_OVER_PI * (y + 0.044715 * y * y * y)))
            else:
                g = 0.5 * y * (1.0 + jax.lax.erf(y * _SQRT_HALF))

            # Linear (W stored as (din, dout), i.e. PyTorch weight transposed).
            h = jnp.dot(g, w, preferred_element_type=jnp.float32) + bias

        o_ref[...] = h.astype(o_ref.dtype)            # (tile_rows, d_last)

    return kernel


def cls_pred_branch_pallas(x, params, dims, *, tile_rows=None, use_tanh_gelu=False):
    """Fused cls_pred_branch. x: [N, d0] -> [N, d_last] (d_last == 1 here)."""
    N, d0 = x.shape
    assert d0 == dims[0]
    n_layers = len(params)
    assert n_layers == len(dims) - 1
    d_last = dims[-1]

    # Row-tile selection: big tiles (amortize ~0.35us/step overhead) but
    # >= 2 grid steps when N > 8 so both v7x TensorCores get work, and
    # sized to minimise row padding.
    if tile_rows is None:
        max_tile = 2048
        n_tiles = (N + max_tile - 1) // max_tile
        if N > 8:
            n_tiles = max(n_tiles, 2)
        tile_rows = _round_up((N + n_tiles - 1) // n_tiles, 8)
    tile_rows = max(8, _round_up(int(tile_rows), 8))
    n_pad = _round_up(N, tile_rows)

    # Only materialize a padded copy when strictly necessary.
    xp = x if n_pad == N else jnp.zeros((n_pad, d0), x.dtype).at[:N, :].set(x)

    flat_inputs = [xp]
    in_specs = [pl.BlockSpec((tile_rows, d0), lambda i: (i, 0))]
    for j, (gamma, beta, w, b) in enumerate(params):
        din, dout = dims[j], dims[j + 1]
        assert gamma.shape == (1, din) and beta.shape == (1, din)
        assert w.shape == (din, dout) and b.shape == (1, dout)
        flat_inputs += [gamma, beta, w, b]
        # Full-array blocks with constant index_maps: params are fetched once
        # and stay resident in VMEM across row tiles.
        in_specs += [
            pl.BlockSpec((1, din), lambda i: (0, 0)),
            pl.BlockSpec((1, din), lambda i: (0, 0)),
            pl.BlockSpec((din, dout), lambda i: (0, 0)),
            pl.BlockSpec((1, dout), lambda i: (0, 0)),
        ]

    kernel = _make_fused_cls_head_kernel(dims, use_tanh_gelu)

    out = pl.pallas_call(
        kernel,
        out_shape=jax.ShapeDtypeStruct((n_pad, d_last), jnp.float32),
        grid_spec=pltpu.PrefetchScalarGridSpec(
            num_scalar_prefetch=0,
            grid=(n_pad // tile_rows,),
            in_specs=in_specs,
            out_specs=pl.BlockSpec((tile_rows, d_last), lambda i: (i, 0)),
        ),
        compiler_params=pltpu.CompilerParams(
            dimension_semantics=("parallel",)),
    )(*flat_inputs)

    return out[:N] if n_pad != N else out


# ----------------------------------------------------------------------------
# Parameter construction (deterministic, mirrors the PyTorch __init__ shapes).
# NOTE: W is stored as (din, dout); PyTorch nn.Linear stores (out, in) — real
# checkpoints must be transposed when loaded.
# ----------------------------------------------------------------------------
def make_cls_head_params(inner_dim, num_discriminator_layers, key):
    # torch.linspace(inner_dim, 1, num_layers+1, dtype=int) truncates to int.
    dims = np.linspace(inner_dim, 1, num_discriminator_layers + 1)
    dims = [int(d) for d in dims.astype(np.int64)]

    params = []
    for j in range(len(dims) - 1):
        din, dout = dims[j], dims[j + 1]
        key, kw, kb = jax.random.split(key, 3)
        # LayerNorm: gamma=1, beta=0 (PyTorch default init)
        gamma = jnp.ones((1, din), jnp.float32)
        beta = jnp.zeros((1, din), jnp.float32)
        # Linear: uniform(-1/sqrt(fan_in), 1/sqrt(fan_in)) like PyTorch default
        bound = 1.0 / math.sqrt(din)
        w = jax.random.uniform(kw, (din, dout), jnp.float32, -bound, bound)
        b = jax.random.uniform(kb, (1, dout), jnp.float32, -bound, bound)
        params.append((gamma, beta, w, b))
    return params, dims


# Pure-JAX reference for sanity checking.
def cls_pred_branch_ref(x, params):
    for (gamma, beta, w, b) in params:
        mean = jnp.mean(x, axis=-1, keepdims=True)
        var = jnp.mean((x - mean) ** 2, axis=-1, keepdims=True)
        xhat = (x - mean) / jnp.sqrt(var + 1e-5)
        y = xhat * gamma + beta
        g = 0.5 * y * (1.0 + jax.lax.erf(y / jnp.sqrt(2.0)))
        x = g @ w + b
    return x


if __name__ == "__main__":
    # Small shapes: teacher inner_dim=32, 3 discriminator layers,
    # tokens = batch(2) * seq(8) = 16
    inner_dim = 32
    num_discriminator_layers = 3
    batch, seq = 2, 8
    N = batch * seq

    key = jax.random.PRNGKey(0)
    key, kx = jax.random.split(key)
    params, dims = make_cls_head_params(inner_dim, num_discriminator_layers, key)

    # x: per-token hidden states from the (frozen) teacher transformer
    x = jax.random.normal(kx, (N, inner_dim), jnp.float32)

    out = cls_pred_branch_pallas(x, params, dims)
    out = jax.block_until_ready(out)

    ref = cls_pred_branch_ref(x, params)
    assert out.shape == (N, dims[-1]), (out.shape, dims)
    np.testing.assert_allclose(np.asarray(out), np.asarray(ref),
                               rtol=1e-5, atol=1e-5)
    print("KERNEL_OK")
</pallas_src>

<mosaic_0001>
module attributes {stable_mosaic.version = 11 : i64} {
  func.func @kernel(%arg0: i32, %arg1: memref<8x32xf32, #tpu.memory_space<vmem>>, %arg2: memref<1x32xf32, #tpu.memory_space<vmem>>, %arg3: memref<1x32xf32, #tpu.memory_space<vmem>>, %arg4: memref<32x21xf32, #tpu.memory_space<vmem>>, %arg5: memref<1x21xf32, #tpu.memory_space<vmem>>, %arg6: memref<1x21xf32, #tpu.memory_space<vmem>>, %arg7: memref<1x21xf32, #tpu.memory_space<vmem>>, %arg8: memref<21x11xf32, #tpu.memory_space<vmem>>, %arg9: memref<1x11xf32, #tpu.memory_space<vmem>>, %arg10: memref<1x11xf32, #tpu.memory_space<vmem>>, %arg11: memref<1x11xf32, #tpu.memory_space<vmem>>, %arg12: memref<11x1xf32, #tpu.memory_space<vmem>>, %arg13: memref<1x1xf32, #tpu.memory_space<vmem>>, %arg14: memref<8x1xf32, #tpu.memory_space<vmem>>) attributes {dimension_semantics = [#tpu.dimension_semantics<parallel>], iteration_bounds = array<i64: 2>, scalar_prefetch = 0 : i64, scratch_operands = 0 : i64, tpu.core_type = #tpu.core_type<tc>, window_params = [{transform_indices = @transform_0, window_bounds = array<i64: 8, 32>}, {pipeline_mode = #tpu.pipeline_mode<synchronous>, transform_indices = @transform_1, window_bounds = array<i64: 1, 32>}, {pipeline_mode = #tpu.pipeline_mode<synchronous>, transform_indices = @transform_2, window_bounds = array<i64: 1, 32>}, {pipeline_mode = #tpu.pipeline_mode<synchronous>, transform_indices = @transform_3, window_bounds = array<i64: 32, 21>}, {pipeline_mode = #tpu.pipeline_mode<synchronous>, transform_indices = @transform_4, window_bounds = array<i64: 1, 21>}, {pipeline_mode = #tpu.pipeline_mode<synchronous>, transform_indices = @transform_5, window_bounds = array<i64: 1, 21>}, {pipeline_mode = #tpu.pipeline_mode<synchronous>, transform_indices = @transform_6, window_bounds = array<i64: 1, 21>}, {pipeline_mode = #tpu.pipeline_mode<synchronous>, transform_indices = @transform_7, window_bounds = array<i64: 21, 11>}, {pipeline_mode = #tpu.pipeline_mode<synchronous>, transform_indices = @transform_8, window_bounds = array<i64: 1, 11>}, {pipeline_mode = #tpu.pipeline_mode<synchronous>, transform_indices = @transform_9, window_bounds = array<i64: 1, 11>}, {pipeline_mode = #tpu.pipeline_mode<synchronous>, transform_indices = @transform_10, window_bounds = array<i64: 1, 11>}, {pipeline_mode = #tpu.pipeline_mode<synchronous>, transform_indices = @transform_11, window_bounds = array<i64: 11, 1>}, {pipeline_mode = #tpu.pipeline_mode<synchronous>, transform_indices = @transform_12, window_bounds = array<i64: 1, 1>}, {transform_indices = @transform_13, window_bounds = array<i64: 8, 1>}]} {
    %c0 = arith.constant 0 : index
    %c0_0 = arith.constant 0 : index
    %0 = vector.load %arg1[%c0, %c0_0] : memref<8x32xf32, #tpu.memory_space<vmem>>, vector<8x32xf32>
    %c0_1 = arith.constant 0 : index
    %c0_2 = arith.constant 0 : index
    %1 = vector.load %arg2[%c0_1, %c0_2] : memref<1x32xf32, #tpu.memory_space<vmem>>, vector<1x32xf32>
    %c0_3 = arith.constant 0 : index
    %c0_4 = arith.constant 0 : index
    %2 = vector.load %arg3[%c0_3, %c0_4] : memref<1x32xf32, #tpu.memory_space<vmem>>, vector<1x32xf32>
    %c0_5 = arith.constant 0 : index
    %c0_6 = arith.constant 0 : index
    %3 = vector.load %arg4[%c0_5, %c0_6] : memref<32x21xf32, #tpu.memory_space<vmem>>, vector<32x21xf32>
    %c0_7 = arith.constant 0 : index
    %c0_8 = arith.constant 0 : index
    %4 = vector.load %arg5[%c0_7, %c0_8] : memref<1x21xf32, #tpu.memory_space<vmem>>, vector<1x21xf32>
    %cst = arith.constant dense<0.000000e+00> : vector<8xf32>
    %5 = vector.multi_reduction <add>, %0, %cst [1] : vector<8x32xf32> to vector<8xf32>
    %6 = vector.shape_cast %5 : vector<8xf32> to vector<8x1xf32>
    %cst_9 = arith.constant 3.125000e-02 : f32
    %7 = vector.broadcast %cst_9 : f32 to vector<8x1xf32>
    %8 = arith.mulf %6, %7 : vector<8x1xf32>
    %9 = vector.broadcast %8 : vector<8x1xf32> to vector<8x32xf32>
    %10 = arith.subf %0, %9 : vector<8x32xf32>
    %11 = arith.mulf %10, %10 : vector<8x32xf32>
    %cst_10 = arith.constant dense<0.000000e+00> : vector<8xf32>
    %12 = vector.multi_reduction <add>, %11, %cst_10 [1] : vector<8x32xf32> to vector<8xf32>
    %13 = vector.shape_cast %12 : vector<8xf32> to vector<8x1xf32>
    %cst_11 = arith.constant 3.125000e-02 : f32
    %14 = vector.broadcast %cst_11 : f32 to vector<8x1xf32>
    %15 = arith.mulf %13, %14 : vector<8x1xf32>
    %cst_12 = arith.constant 9.99999974E-6 : f32
    %16 = vector.broadcast %cst_12 : f32 to vector<8x1xf32>
    %17 = arith.addf %15, %16 : vector<8x1xf32>
    %18 = math.rsqrt %17 : vector<8x1xf32>
    %19 = vector.broadcast %18 : vector<8x1xf32> to vector<8x32xf32>
    %20 = arith.mulf %10, %19 : vector<8x32xf32>
    %21 = vector.broadcast %1 : vector<1x32xf32> to vector<8x32xf32>
    %22 = arith.mulf %20, %21 : vector<8x32xf32>
    %23 = vector.broadcast %2 : vector<1x32xf32> to vector<8x32xf32>
    %24 = arith.addf %22, %23 : vector<8x32xf32>
    %cst_13 = arith.constant 5.000000e-01 : f32
    %25 = vector.broadcast %cst_13 : f32 to vector<8x32xf32>
    %26 = arith.mulf %25, %24 : vector<8x32xf32>
    %cst_14 = arith.constant 0.707106769 : f32
    %27 = vector.broadcast %cst_14 : f32 to vector<8x32xf32>
    %28 = arith.mulf %24, %27 : vector<8x32xf32>
    %29 = math.erf %28 : vector<8x32xf32>
    %cst_15 = arith.constant 1.000000e+00 : f32
    %30 = vector.broadcast %cst_15 : f32 to vector<8x32xf32>
    %31 = arith.addf %30, %29 : vector<8x32xf32>
    %32 = arith.mulf %26, %31 : vector<8x32xf32>
    %cst_16 = arith.constant dense<0.000000e+00> : vector<8x21xf32>
    %33 = tpu.matmul %32, %3, %cst_16 {dimension_numbers = #tpu.dot_dimension_numbers<[1], [0], [0], [1], [0, 0, 1, 1], [], []>} : vector<8x32xf32>, vector<32x21xf32>, vector<8x21xf32> -> vector<8x21xf32>
    %34 = vector.broadcast %4 : vector<1x21xf32> to vector<8x21xf32>
    %35 = arith.addf %33, %34 : vector<8x21xf32>
    %c0_17 = arith.constant 0 : index
    %c0_18 = arith.constant 0 : index
    %36 = vector.load %arg6[%c0_17, %c0_18] : memref<1x21xf32, #tpu.memory_space<vmem>>, vector<1x21xf32>
    %c0_19 = arith.constant 0 : index
    %c0_20 = arith.constant 0 : index
    %37 = vector.load %arg7[%c0_19, %c0_20] : memref<1x21xf32, #tpu.memory_space<vmem>>, vector<1x21xf32>
    %c0_21 = arith.constant 0 : index
    %c0_22 = arith.constant 0 : index
    %38 = vector.load %arg8[%c0_21, %c0_22] : memref<21x11xf32, #tpu.memory_space<vmem>>, vector<21x11xf32>
    %c0_23 = arith.constant 0 : index
    %c0_24 = arith.constant 0 : index
    %39 = vector.load %arg9[%c0_23, %c0_24] : memref<1x11xf32, #tpu.memory_space<vmem>>, vector<1x11xf32>
    %cst_25 = arith.constant dense<0.000000e+00> : vector<8xf32>
    %40 = vector.multi_reduction <add>, %35, %cst_25 [1] : vector<8x21xf32> to vector<8xf32>
    %41 = vector.shape_cast %40 : vector<8xf32> to vector<8x1xf32>
    %cst_26 = arith.constant 0.0476190485 : f32
    %42 = vector.broadcast %cst_26 : f32 to vector<8x1xf32>
    %43 = arith.mulf %41, %42 : vector<8x1xf32>
    %44 = vector.broadcast %43 : vector<8x1xf32> to vector<8x21xf32>
    %45 = arith.subf %35, %44 : vector<8x21xf32>
    %46 = arith.mulf %45, %45 : vector<8x21xf32>
    %cst_27 = arith.constant dense<0.000000e+00> : vector<8xf32>
    %47 = vector.multi_reduction <add>, %46, %cst_27 [1] : vector<8x21xf32> to vector<8xf32>
    %48 = vector.shape_cast %47 : vector<8xf32> to vector<8x1xf32>
    %cst_28 = arith.constant 0.0476190485 : f32
    %49 = vector.broadcast %cst_28 : f32 to vector<8x1xf32>
    %50 = arith.mulf %48, %49 : vector<8x1xf32>
    %cst_29 = arith.constant 9.99999974E-6 : f32
    %51 = vector.broadcast %cst_29 : f32 to vector<8x1xf32>
    %52 = arith.addf %50, %51 : vector<8x1xf32>
    %53 = math.rsqrt %52 : vector<8x1xf32>
    %54 = vector.broadcast %53 : vector<8x1xf32> to vector<8x21xf32>
    %55 = arith.mulf %45, %54 : vector<8x21xf32>
    %56 = vector.broadcast %36 : vector<1x21xf32> to vector<8x21xf32>
    %57 = arith.mulf %55, %56 : vector<8x21xf32>
    %58 = vector.broadcast %37 : vector<1x21xf32> to vector<8x21xf32>
    %59 = arith.addf %57, %58 : vector<8x21xf32>
    %cst_30 = arith.constant 5.000000e-01 : f32
    %60 = vector.broadcast %cst_30 : f32 to vector<8x21xf32>
    %61 = arith.mulf %60, %59 : vector<8x21xf32>
    %cst_31 = arith.constant 0.707106769 : f32
    %62 = vector.broadcast %cst_31 : f32 to vector<8x21xf32>
    %63 = arith.mulf %59, %62 : vector<8x21xf32>
    %64 = math.erf %63 : vector<8x21xf32>
    %cst_32 = arith.constant 1.000000e+00 : f32
    %65 = vector.broadcast %cst_32 : f32 to vector<8x21xf32>
    %66 = arith.addf %65, %64 : vector<8x21xf32>
    %67 = arith.mulf %61, %66 : vector<8x21xf32>
    %cst_33 = arith.constant dense<0.000000e+00> : vector<8x11xf32>
    %68 = tpu.matmul %67, %38, %cst_33 {dimension_numbers = #tpu.dot_dimension_numbers<[1], [0], [0], [1], [0, 0, 1, 1], [], []>} : vector<8x21xf32>, vector<21x11xf32>, vector<8x11xf32> -> vector<8x11xf32>
    %69 = vector.broadcast %39 : vector<1x11xf32> to vector<8x11xf32>
    %70 = arith.addf %68, %69 : vector<8x11xf32>
    %c0_34 = arith.constant 0 : index
    %c0_35 = arith.constant 0 : index
    %71 = vector.load %arg10[%c0_34, %c0_35] : memref<1x11xf32, #tpu.memory_space<vmem>>, vector<1x11xf32>
    %c0_36 = arith.constant 0 : index
    %c0_37 = arith.constant 0 : index
    %72 = vector.load %arg11[%c0_36, %c0_37] : memref<1x11xf32, #tpu.memory_space<vmem>>, vector<1x11xf32>
    %c0_38 = arith.constant 0 : index
    %c0_39 = arith.constant 0 : index
    %73 = vector.load %arg12[%c0_38, %c0_39] : memref<11x1xf32, #tpu.memory_space<vmem>>, vector<11x1xf32>
    %c0_40 = arith.constant 0 : index
    %c0_41 = arith.constant 0 : index
    %74 = vector.load %arg13[%c0_40, %c0_41] : memref<1x1xf32, #tpu.memory_space<vmem>>, vector<1x1xf32>
    %cst_42 = arith.constant dense<0.000000e+00> : vector<8xf32>
    %75 = vector.multi_reduction <add>, %70, %cst_42 [1] : vector<8x11xf32> to vector<8xf32>
    %76 = vector.shape_cast %75 : vector<8xf32> to vector<8x1xf32>
    %cst_43 = arith.constant 0.0909090936 : f32
    %77 = vector.broadcast %cst_43 : f32 to vector<8x1xf32>
    %78 = arith.mulf %76, %77 : vector<8x1xf32>
    %79 = vector.broadcast %78 : vector<8x1xf32> to vector<8x11xf32>
    %80 = arith.subf %70, %79 : vector<8x11xf32>
    %81 = arith.mulf %80, %80 : vector<8x11xf32>
    %cst_44 = arith.constant dense<0.000000e+00> : vector<8xf32>
    %82 = vector.multi_reduction <add>, %81, %cst_44 [1] : vector<8x11xf32> to vector<8xf32>
    %83 = vector.shape_cast %82 : vector<8xf32> to vector<8x1xf32>
    %cst_45 = arith.constant 0.0909090936 : f32
    %84 = vector.broadcast %cst_45 : f32 to vector<8x1xf32>
    %85 = arith.mulf %83, %84 : vector<8x1xf32>
    %cst_46 = arith.constant 9.99999974E-6 : f32
    %86 = vector.broadcast %cst_46 : f32 to vector<8x1xf32>
    %87 = arith.addf %85, %86 : vector<8x1xf32>
    %88 = math.rsqrt %87 : vector<8x1xf32>
    %89 = vector.broadcast %88 : vector<8x1xf32> to vector<8x11xf32>
    %90 = arith.mulf %80, %89 : vector<8x11xf32>
    %91 = vector.broadcast %71 : vector<1x11xf32> to vector<8x11xf32>
    %92 = arith.mulf %90, %91 : vector<8x11xf32>
    %93 = vector.broadcast %72 : vector<1x11xf32> to vector<8x11xf32>
    %94 = arith.addf %92, %93 : vector<8x11xf32>
    %cst_47 = arith.constant 5.000000e-01 : f32
    %95 = vector.broadcast %cst_47 : f32 to vector<8x11xf32>
    %96 = arith.mulf %95, %94 : vector<8x11xf32>
    %cst_48 = arith.constant 0.707106769 : f32
    %97 = vector.broadcast %cst_48 : f32 to vector<8x11xf32>
    %98 = arith.mulf %94, %97 : vector<8x11xf32>
    %99 = math.erf %98 : vector<8x11xf32>
    %cst_49 = arith.constant 1.000000e+00 : f32
    %100 = vector.broadcast %cst_49 : f32 to vector<8x11xf32>
    %101 = arith.addf %100, %99 : vector<8x11xf32>
    %102 = arith.mulf %96, %101 : vector<8x11xf32>
    %cst_50 = arith.constant dense<0.000000e+00> : vector<8x1xf32>
    %103 = tpu.matmul %102, %73, %cst_50 {dimension_numbers = #tpu.dot_dimension_numbers<[1], [0], [0], [1], [0, 0, 1, 1], [], []>} : vector<8x11xf32>, vector<11x1xf32>, vector<8x1xf32> -> vector<8x1xf32>
    %104 = vector.broadcast %74 : vector<1x1xf32> to vector<8x1xf32>
    %105 = arith.addf %103, %104 : vector<8x1xf32>
    %c0_51 = arith.constant 0 : index
    %c0_52 = arith.constant 0 : index
    %106 = vector.load %arg14[%c0_51, %c0_52] : memref<8x1xf32, #tpu.memory_space<vmem>>, vector<8x1xf32>
    tpu.vector_store %arg14[%c0_51, %c0_52], %105 {strides = array<i32>} : memref<8x1xf32, #tpu.memory_space<vmem>>, vector<8x1xf32>,
    return
  }
  func.func @transform_0(%arg0: i32) -> (i32, i32) {
    %c0_i32 = arith.constant 0 : i32
    %c0_i32_0 = arith.constant 0 : i32
    return %arg0, %c0_i32 : i32, i32
  }
  func.func @transform_1(%arg0: i32) -> (i32, i32) {
    %c0_i32 = arith.constant 0 : i32
    %c0_i32_0 = arith.constant 0 : i32
    %c0_i32_1 = arith.constant 0 : i32
    return %c0_i32, %c0_i32_0 : i32, i32
  }
  func.func @transform_2(%arg0: i32) -> (i32, i32) {
    %c0_i32 = arith.constant 0 : i32
    %c0_i32_0 = arith.constant 0 : i32
    %c0_i32_1 = arith.constant 0 : i32
    return %c0_i32, %c0_i32_0 : i32, i32
  }
  func.func @transform_3(%arg0: i32) -> (i32, i32) {
    %c0_i32 = arith.constant 0 : i32
    %c0_i32_0 = arith.constant 0 : i32
    %c0_i32_1 = arith.constant 0 : i32
    return %c0_i32, %c0_i32_0 : i32, i32
  }
  func.func @transform_4(%arg0: i32) -> (i32, i32) {
    %c0_i32 = arith.constant 0 : i32
    %c0_i32_0 = arith.constant 0 : i32
    %c0_i32_1 = arith.constant 0 : i32
    return %c0_i32, %c0_i32_0 : i32, i32
  }
  func.func @transform_5(%arg0: i32) -> (i32, i32) {
    %c0_i32 = arith.constant 0 : i32
    %c0_i32_0 = arith.constant 0 : i32
    %c0_i32_1 = arith.constant 0 : i32
    return %c0_i32, %c0_i32_0 : i32, i32
  }
  func.func @transform_6(%arg0: i32) -> (i32, i32) {
    %c0_i32 = arith.constant 0 : i32
    %c0_i32_0 = arith.constant 0 : i32
    %c0_i32_1 = arith.constant 0 : i32
    return %c0_i32, %c0_i32_0 : i32, i32
  }
  func.func @transform_7(%arg0: i32) -> (i32, i32) {
    %c0_i32 = arith.constant 0 : i32
    %c0_i32_0 = arith.constant 0 : i32
    %c0_i32_1 = arith.constant 0 : i32
    return %c0_i32, %c0_i32_0 : i32, i32
  }
  func.func @transform_8(%arg0: i32) -> (i32, i32) {
    %c0_i32 = arith.constant 0 : i32
    %c0_i32_0 = arith.constant 0 : i32
    %c0_i32_1 = arith.constant 0 : i32
    return %c0_i32, %c0_i32_0 : i32, i32
  }
  func.func @transform_9(%arg0: i32) -> (i32, i32) {
    %c0_i32 = arith.constant 0 : i32
    %c0_i32_0 = arith.constant 0 : i32
    %c0_i32_1 = arith.constant 0 : i32
    return %c0_i32, %c0_i32_0 : i32, i32
  }
  func.func @transform_10(%arg0: i32) -> (i32, i32) {
    %c0_i32 = arith.constant 0 : i32
    %c0_i32_0 = arith.constant 0 : i32
    %c0_i32_1 = arith.constant 0 : i32
    return %c0_i32, %c0_i32_0 : i32, i32
  }
  func.func @transform_11(%arg0: i32) -> (i32, i32) {
    %c0_i32 = arith.constant 0 : i32
    %c0_i32_0 = arith.constant 0 : i32
    %c0_i32_1 = arith.constant 0 : i32
    return %c0_i32, %c0_i32_0 : i32, i32
  }
  func.func @transform_12(%arg0: i32) -> (i32, i32) {
    %c0_i32 = arith.constant 0 : i32
    %c0_i32_0 = arith.constant 0 : i32
    %c0_i32_1 = arith.constant 0 : i32
    return %c0_i32, %c0_i32_0 : i32, i32
  }
  func.func @transform_13(%arg0: i32) -> (i32, i32) {
    %c0_i32 = arith.constant 0 : i32
    %c0_i32_0 = arith.constant 0 : i32
    return %arg0, %c0_i32 : i32, i32
  }
}

</mosaic_0001>

<bundles_post_ra>
// kernel: tpu_custom_call.1
= control target key start
LH: loop header
LB: loop body
LE: loop exit
PB: predicated region body
PF: predicated region fallthrough
CT: control target
= control target key end

     0   :  { %s1023_s27 = smov 0   ;;  %s1122_s0 = inlined_call_operand.vmem [shape: f32[16,32], index: 0, kind: input, shape index: {}]   ;;  %s1123_s1 = inlined_call_operand.vmem [shape: f32[1,32], index: 1, kind: input, shape index: {}]   ;;  %s1124_s2 = inlined_call_operand.vmem [shape: f32[1,32], index: 2, kind: input, shape index: {}]   ;;  %s1125_s3 = inlined_call_operand.vmem [shape: f32[32,21], index: 3, kind: input, shape index: {}]   ;;  %s1126_s4 = inlined_call_operand.vmem [shape: f32[1,21], index: 4, kind: input, shape index: {}]   ;;  %s1127_s5 = inlined_call_operand.vmem [shape: f32[1,21], index: 5, kind: input, shape index: {}]   ;;  %s1128_s6 = inlined_call_operand.vmem [shape: f32[1,21], index: 6, kind: input, shape index: {}]   ;;  %s1129_s7 = inlined_call_operand.vmem [shape: f32[21,11], index: 7, kind: input, shape index: {}]   ;;  %s1130_s8 = inlined_call_operand.vmem [shape: f32[1,11], index: 8, kind: input, shape index: {}]   ;;  %s1131_s9 = inlined_call_operand.vmem [shape: f32[1,11], index: 9, kind: input, shape index: {}]   ;;  %s1132_s10 = inlined_call_operand.vmem [shape: f32[1,11], index: 10, kind: input, shape index: {}]   ;;  %s1133_s11 = inlined_call_operand.vmem [shape: f32[11,1], index: 11, kind: input, shape index: {}]   ;;  %s1134_s12 = inlined_call_operand.<no memory space> [shape: f32[1,1], index: 12, kind: input, shape index: {}]   ;;  %s1135_s13 = inlined_call_operand.vmem [shape: f32[16,1], index: 13, kind: output, shape index: {}]  }
   0x1   :  { %v18_v0 = vstv %s1134_s12 }
   0x2   :  { %19 = vst [vmem:[#allocation2] sm:$0x1] %v18_v0 }
   0x3 LB: > { %s856_s28 = sadd.s32 4294967295, %s946_s27   ;;  %p860_p0 = scmp.ge.s32.totalorder %s946_s27, 1  ;;  %s946_s27 = sphi %s1023_s27, %s25_s27  }
   0x4   : > { %p388_p1 = scmp.lt.s32.totalorder %s946_s27, 3 }
   0x6   : > { %p389_p2 = pnand %p860_p0, %p388_p1 }
   0x7   : > { %p430_p3 = scmp.lt.s32.totalorder (!%p389_p2), %s856_s28, 1 }
   0x8   : > { %392 = sbr.rel (%p389_p2) target bundleno = 1587 (0x633), region = 72 }
   0xd   : > { %s1137_s28 = smov (!%p430_p3, %s856_s28), 1  ;;  %vm446_vm0 = vcmask 261120   ;;  %v444_v8 = vld [vmem:[%s1125_s3 + $0x18] sm:$0xff]  ;;  %v948_v9 = vmov 0.0   ;;  %v443_v10 = vld [vmem:[%s1125_s3 + $0x10] sm:$0xff]  ;;  %vm949_vm1 = vmmov 0  }
   0xe   : > { %s861_s12 = sshll.u32 %s1137_s28, 3  ;;  %891 = vmatprep.subr.mxu0 %v948_v9  ;;  %899 = vmatprep.mubr.msk.f32.mxu0 %vm949_vm1, %v948_v9  ;;  %v442_v11 = vld [vmem:[%s1125_s3 + $0x8] sm:$0xff]  ;;  %v441_v12 = vld [vmem:[%s1125_s3] sm:$0xff]  ;;  %vm564_vm2 = vcmask 171008   ;;  %v562_v37 = vld [vmem:[%s1129_s7 + $0x10] sm:$0x1f] }
   0xf   : > { %s433_s14 = scalar_lea.vmem %s1122_s0, %s861_s12  ;;  %892 = vmatpush3.msra.mxu0 %v444_v8  ;;  %902 = vmatprep.subr.mxu1 %v948_v9  ;;  %v863_v17 = vld [vmem:[%s1123_s1] ss:$0 sm:$0xff]  ;;  %vm606_vm3 = vcmask 1044480   ;;  %v561_v38 = vld [vmem:[%s1129_s7 + $0x8] sm:$0xff]  ;;  %vm685_vm4 = vcmask 89088   ;;  %vm727_vm5 = vcmask 1042432   ;;  %s437_s21 = scalar_lea.vmem %s1135_s13, %s861_s12 }
  0x10   : > { %v438_v1 = vld [vmem:[%s433_s14] sm:$0xff]  ;;  %893 = vmatprep.subr.mxu0 %v948_v9  ;;  %908 = vmatprep.mubr.msk.f32.mxu1 %vm949_vm1, %v948_v9  ;;  %v683_v0 = vld [vmem:[%s1133_s11 + $0x8] sm:$0x7]  ;;  %vm801_vm6 = vcmask 7168  }
  0x11   : > { %v447_v2 = vsel %vm446_vm0, %v438_v1, 0.0  ;;  %894 = vmatpush3.msra.mxu0 %v443_v10  ;;  %v864_v19 = vld [vmem:[%s1124_s2] ss:$0 sm:$0xff]  ;;  %903 = vmatpush3.msk.msra.mxu1 %vm606_vm3, %v562_v37 }
  0x12   : > { %448 = vadd.xlane.f32.xlu0 %v447_v2  ;;  %895 = vmatprep.subr.mxu0 %v948_v9  ;;  %v865_v27 = vld [vmem:[%s1126_s4] ss:$0 sm:$0xff] }
  0x13   : > { %896 = vmatpush3.msra.mxu0 %v442_v11  ;;  %904 = vmatprep.subr.mxu1 %v948_v9  ;;  %v560_v39 = vld [vmem:[%s1129_s7] sm:$0xff] }
  0x14   : > { %897 = vmatprep.subr.mxu0 %v948_v9  ;;  %905 = vmatpush3.msra.mxu1 %v561_v38  ;;  %v867_v44 = vld [vmem:[%s1127_s5] ss:$0 sm:$0xff] }
  0x15   : > { %898 = vmatpush3.msra.mxu0 %v441_v12  ;;  %906 = vmatprep.subr.mxu1 %v948_v9  ;;  %v868_v46 = vld [vmem:[%s1128_s6] ss:$0 sm:$0xff] }
  0x16   : > { %907 = vmatpush3.msra.mxu1 %v560_v39  ;;  %v869_v54 = vld [vmem:[%s1130_s8] ss:$0 sm:$0xff] }
  0x17   : > { %911 = vmatprep.subr.mxu1 %v948_v9  ;;  %v873_v8 = vld [vmem:[%s1132_s10] ss:$0 sm:$0xff] }
  0x9b   : > { %v449_v3 = vpop.xlane.xlu0 %448 }
  0x9c   : > { %v450_v4 = vmul.f32 0.03125, %v449_v3 }
  0x9e   : > { %v451_v5 = vsub.f32 %v438_v1, %v450_v4  ;;  %v682_v1 = vld [vmem:[%s1133_s11] sm:$0xff] }
  0xa0   : > { %v452_v6 = vmul.f32 %v451_v5, %v451_v5 }
  0xa2   : > { %v453_v7 = vsel %vm446_vm0, %v452_v6, 0.0  ;;  %v872_v6 = vld [vmem:[%s1131_s9] ss:$0 sm:$0xff] }
  0xa3   : > { %454 = vadd.xlane.f32.xlu0 %v453_v7 }
 0x12c   : > { %v455_v13 = vpop.xlane.xlu0 %454 }
 0x12d   : > { %v456_v14 = vmul.f32 0.03125, %v455_v13 }
 0x12f   : > { %v457_v15 = vadd.f32 1e-05, %v456_v14 }
 0x131   : > { %928 = vrsqrt.f32 %v457_v15 }
 0x13e   : > { %v929_v16 = vpop.eup %928 }
 0x13f   : > { %v459_v18 = vmul.f32 %v929_v16, %v451_v5  ;;  %v874_v16 = vld [vmem:[#allocation2] ss:$0 sm:$0xff] }
 0x141   : > { %v466_v20 = vmul.f32 %v863_v17, %v459_v18 }
 0x143   : > { %v473_v21 = vadd.f32 %v864_v19, %v466_v20 }
 0x145   : > { %v475_v22 = vmul.f32 0.70710677, %v473_v21  ;;  %v474_v24 = vmul.f32 0.5, %v473_v21 }
 0x147   : > { %930 = verf.f32 %v475_v22 }
 0x154   : > { %v931_v23 = vpop.eup %930 }
 0x155   : > { %v477_v25 = vadd.f32 1.0, %v931_v23 }
 0x157   : > { %v478_v26 = vmul.f32 %v477_v25, %v474_v24 }
 0x159   : > { %900 = vmatmul.mubr.msk.f32.vlgmr.msra.gmra.mxu0 %vm446_vm0, %v478_v26 }
 0x219   : > { %v554_v28 = vpop.f32.mrf.mxu0 }
 0x21a   : > { %v555_v29 = vadd.f32 %v865_v27, %v554_v28 }
 0x21b   : > { %v901_v30 = vpop.f32.mrf.mxu0 }
 0x21c   : > { %v565_v31 = vsel %vm564_vm2, %v555_v29, 0.0 }
 0x21d   : > { %566 = vadd.xlane.f32.xlu1 %v565_v31 }
 0x2a6   : > { %v567_v32 = vpop.xlane.xlu1 %566 }
 0x2a7   : > { %v568_v33 = vmul.f32 0.04761905, %v567_v32 }
 0x2a9   : > { %v569_v34 = vsub.f32 %v555_v29, %v568_v33 }
 0x2ab   : > { %v570_v35 = vmul.f32 %v569_v34, %v569_v34 }
 0x2ad   : > { %v571_v36 = vsel %vm564_vm2, %v570_v35, 0.0 }
 0x2ae   : > { %572 = vadd.xlane.f32.xlu1 %v571_v36 }
 0x337   : > { %v573_v40 = vpop.xlane.xlu1 %572 }
 0x338   : > { %v574_v41 = vmul.f32 0.04761905, %v573_v40 }
 0x33a   : > { %v575_v42 = vadd.f32 1e-05, %v574_v41 }
 0x33c   : > { %932 = vrsqrt.f32 %v575_v42 }
 0x349   : > { %v933_v43 = vpop.eup %932 }
 0x34a   : > { %v577_v45 = vmul.f32 %v933_v43, %v569_v34 }
 0x34c   : > { %v584_v47 = vmul.f32 %v867_v44, %v577_v45 }
 0x34e   : > { %v591_v48 = vadd.f32 %v868_v46, %v584_v47 }
 0x350   : > { %v593_v49 = vmul.f32 0.70710677, %v591_v48  ;;  %v592_v51 = vmul.f32 0.5, %v591_v48 }
 0x352   : > { %934 = verf.f32 %v593_v49 }
 0x35f   : > { %v935_v50 = vpop.eup %934 }
 0x360   : > { %v595_v52 = vadd.f32 1.0, %v935_v50 }
 0x362   : > { %v596_v53 = vmul.f32 %v595_v52, %v592_v51 }
 0x364   : > { %909 = vmatmul.mubr.msk.f32.vlgmr.msra.gmra.mxu1 %vm564_vm2, %v596_v53 }
 0x365   : > { %915 = vmatprep.mubr.msk.f32.mxu1 %vm949_vm1, %v948_v9  ;;  %912 = vmatpush3.msk.msra.mxu1 %vm727_vm5, %v683_v0 }
 0x366   : > { %913 = vmatprep.subr.mxu1 %v948_v9 }
 0x367   : > { %914 = vmatpush3.msra.mxu1 %v682_v1 }
 0x424   : > { %v676_v55 = vpop.f32.mrf.mxu1 }
 0x425   : > { %v677_v56 = vadd.f32 %v869_v54, %v676_v55 }
 0x426   : > { %v910_v57 = vpop.f32.mrf.mxu1 }
 0x427   : > { %v686_v58 = vsel %vm685_vm4, %v677_v56, 0.0 }
 0x428   : > { %687 = vadd.xlane.f32.xlu0 %v686_v58 }
 0x4b1   : > { %v688_v59 = vpop.xlane.xlu0 %687 }
 0x4b2   : > { %v689_v60 = vmul.f32 0.09090909, %v688_v59 }
 0x4b4   : > { %v690_v61 = vsub.f32 %v677_v56, %v689_v60 }
 0x4b6   : > { %v691_v62 = vmul.f32 %v690_v61, %v690_v61 }
 0x4b8   : > { %v692_v63 = vsel %vm685_vm4, %v691_v62, 0.0 }
 0x4b9   : > { %693 = vadd.xlane.f32.xlu1 %v692_v63 }
 0x542   : > { %v694_v2 = vpop.xlane.xlu1 %693 }
 0x543   : > { %v695_v3 = vmul.f32 0.09090909, %v694_v2 }
 0x545   : > { %v696_v4 = vadd.f32 1e-05, %v695_v3 }
 0x547   : > { %936 = vrsqrt.f32 %v696_v4 }
 0x554   : > { %v937_v5 = vpop.eup %936 }
 0x555   : > { %v698_v7 = vmul.f32 %v937_v5, %v690_v61 }
 0x557   : > { %v705_v10 = vmul.f32 %v872_v6, %v698_v7 }
 0x559   : > { %v712_v11 = vadd.f32 %v873_v8, %v705_v10 }
 0x55b   : > { %v714_v12 = vmul.f32 0.70710677, %v712_v11  ;;  %v713_v13 = vmul.f32 0.5, %v712_v11 }
 0x55d   : > { %938 = verf.f32 %v714_v12 }
 0x56a   : > { %v939_v9 = vpop.eup %938 }
 0x56b   : > { %v716_v14 = vadd.f32 1.0, %v939_v9 }
 0x56d   : > { %v717_v15 = vmul.f32 %v716_v14, %v713_v13 }
 0x56f   : > { %916 = vmatmul.mubr.msk.f32.vlgmr.msra.gmra.mxu1 %vm685_vm4, %v717_v15 }
 0x62f   : > { %v797_v17 = vpop.f32.mrf.mxu1 }
 0x630   : > { %v798_v18 = vadd.f32 %v874_v16, %v797_v17 }
 0x631   : > { %v917_v19 = vpop.f32.mrf.mxu1 }
 0x632   : > { %802 = vst.msk [vmem:[%s437_s21] sm:$0xff] %vm801_vm6, %v798_v18 }
 0x633 PF: > { %s25_s27 = sadd.s32 1, %s946_s27  }
 0x634   : > { %p22_p4 = scmp.ge.s32.totalorder %s25_s27, 4  }
 0x636   :  { %24 = sbr.rel (!%p22_p4) target bundleno = 3 (0x3), region = 102 }

</bundles_post_ra>
